<compile_context>
chip_gen: v5e
topology: v5e:2x2
jax: 0.10.0
libtpu: 0.0.40
codegen_flags: <defaults>
</compile_context>

<pallas_src>
import math

import numpy as np
import jax
import jax.numpy as jnp
from jax.experimental import pallas as pl
from jax.experimental.pallas import tpu as pltpu

EPS = 1e-12            # F.normalize default eps
MAX_TOKEN_TILE = 512   # tokens per grid step (sublane axis)


def _cosine_linear_kernel(x_ref, w_ref, o_ref):
    # x tile: (tm, dim_in) with dim_in on lanes; w: (dim_in, dim_out) already
    # column-normalized and scaled by `scale` in the wrapper.
    x = x_ref[...].astype(jnp.float32)
    sq = jnp.sum(x * x, axis=-1, keepdims=True)             # (tm, 1) row |x|^2
    inv = jax.lax.rsqrt(jnp.maximum(sq, EPS * EPS))         # == 1 / max(|x|, eps)
    xn = x * inv                                            # row-normalized x
    o_ref[...] = jnp.dot(xn, w_ref[...],
                         preferred_element_type=jnp.float32).astype(o_ref.dtype)


def cosine_sim_linear(x, weight, scale=1.0):
    """x: (..., dim_in); weight: (dim_in, dim_out)  ->  (..., dim_out)."""
    *lead, dim_in = x.shape
    dim_out = weight.shape[1]
    n = math.prod(lead) if lead else 1

    x2 = x.reshape(n, dim_in)

    # One-off, tiny precompute: normalize weight columns and fold in `scale`.
    w = weight.astype(jnp.float32)
    col_sq = jnp.sum(w * w, axis=0, keepdims=True)
    w_scaled = w * (scale * jax.lax.rsqrt(jnp.maximum(col_sq, EPS * EPS)))

    tm = n if n <= MAX_TOKEN_TILE else MAX_TOKEN_TILE
    grid = (pl.cdiv(n, tm),)

    out = pl.pallas_call(
        _cosine_linear_kernel,
        out_shape=jax.ShapeDtypeStruct((n, dim_out), x.dtype),
        grid=grid,
        in_specs=[
            pl.BlockSpec((tm, dim_in), lambda i: (i, 0)),        # x token tile
            pl.BlockSpec((dim_in, dim_out), lambda i: (0, 0)),   # folded weight
        ],
        out_specs=pl.BlockSpec((tm, dim_out), lambda i: (i, 0)),
        compiler_params=pltpu.CompilerParams(
            dimension_semantics=("parallel",)),                  # no accumulators
    )(x2, w_scaled)

    return out.reshape(*lead, dim_out)


def cosine_sim_linear_reference(x, weight, scale=1.0):
    """Pure-JAX reference matching the PyTorch forward (F.normalize eps=1e-12)."""
    xn = x / jnp.maximum(jnp.linalg.norm(x, axis=-1, keepdims=True), EPS)
    wn = weight / jnp.maximum(jnp.linalg.norm(weight, axis=0, keepdims=True), EPS)
    return (xn @ wn) * scale


if __name__ == "__main__":
    key = jax.random.PRNGKey(0)
    kx, kw = jax.random.split(key)

    batch, seq, dim_in, dim_out = 2, 8, 32, 64
    scale = 0.7

    x = jax.random.normal(kx, (batch, seq, dim_in), jnp.float32)
    # nn.Parameter(torch.randn(dim_in, dim_out)) -> (dim_in, dim_out)
    weight = jax.random.normal(kw, (dim_in, dim_out), jnp.float32)

    run = jax.jit(lambda a, w: cosine_sim_linear(a, w, scale=scale))
    got = jax.block_until_ready(run(x, weight))
    want = cosine_sim_linear_reference(x, weight, scale=scale)

    np.testing.assert_allclose(np.asarray(got), np.asarray(want),
                               rtol=1e-5, atol=1e-5)
    print("KERNEL_OK")
</pallas_src>

<mosaic_0001>
module attributes {stable_mosaic.version = 11 : i64} {
  func.func @_cosine_linear_kernel(%arg0: i32, %arg1: memref<16x32xf32, #tpu.memory_space<vmem>>, %arg2: memref<32x64xf32, #tpu.memory_space<vmem>>, %arg3: memref<16x64xf32, #tpu.memory_space<vmem>>) attributes {dimension_semantics = [#tpu.dimension_semantics<parallel>], iteration_bounds = array<i64: 1>, scalar_prefetch = 0 : i64, scratch_operands = 0 : i64, tpu.core_type = #tpu.core_type<tc>, window_params = [{transform_indices = @transform_0, window_bounds = array<i64: 16, 32>}, {pipeline_mode = #tpu.pipeline_mode<synchronous>, transform_indices = @transform_1, window_bounds = array<i64: 32, 64>}, {transform_indices = @transform_2, window_bounds = array<i64: 16, 64>}]} {
    %c0 = arith.constant 0 : index
    %c0_0 = arith.constant 0 : index
    %0 = vector.load %arg1[%c0, %c0_0] : memref<16x32xf32, #tpu.memory_space<vmem>>, vector<16x32xf32>
    %1 = arith.mulf %0, %0 : vector<16x32xf32>
    %cst = arith.constant dense<0.000000e+00> : vector<16xf32>
    %2 = vector.multi_reduction <add>, %1, %cst [1] : vector<16x32xf32> to vector<16xf32>
    %3 = vector.shape_cast %2 : vector<16xf32> to vector<16x1xf32>
    %cst_1 = arith.constant 1.000000e-24 : f32
    %4 = vector.broadcast %cst_1 : f32 to vector<16x1xf32>
    %5 = arith.maximumf %3, %4 : vector<16x1xf32>
    %6 = math.rsqrt %5 : vector<16x1xf32>
    %7 = vector.broadcast %6 : vector<16x1xf32> to vector<16x32xf32>
    %8 = arith.mulf %0, %7 : vector<16x32xf32>
    %c0_2 = arith.constant 0 : index
    %c0_3 = arith.constant 0 : index
    %9 = vector.load %arg2[%c0_2, %c0_3] : memref<32x64xf32, #tpu.memory_space<vmem>>, vector<32x64xf32>
    %cst_4 = arith.constant dense<0.000000e+00> : vector<16x64xf32>
    %10 = tpu.matmul %8, %9, %cst_4 {dimension_numbers = #tpu.dot_dimension_numbers<[1], [0], [0], [1], [0, 0, 1, 1], [], []>} : vector<16x32xf32>, vector<32x64xf32>, vector<16x64xf32> -> vector<16x64xf32>
    %c0_5 = arith.constant 0 : index
    %c0_6 = arith.constant 0 : index
    %11 = vector.load %arg3[%c0_5, %c0_6] : memref<16x64xf32, #tpu.memory_space<vmem>>, vector<16x64xf32>
    tpu.vector_store %arg3[%c0_5, %c0_6], %10 {strides = array<i32>} : memref<16x64xf32, #tpu.memory_space<vmem>>, vector<16x64xf32>,
    return
  }
  func.func @transform_0(%arg0: i32) -> (i32, i32) {
    %c0_i32 = arith.constant 0 : i32
    %c0_i32_0 = arith.constant 0 : i32
    return %arg0, %c0_i32 : i32, i32
  }
  func.func @transform_1(%arg0: i32) -> (i32, i32) {
    %c0_i32 = arith.constant 0 : i32
    %c0_i32_0 = arith.constant 0 : i32
    %c0_i32_1 = arith.constant 0 : i32
    return %c0_i32, %c0_i32_0 : i32, i32
  }
  func.func @transform_2(%arg0: i32) -> (i32, i32) {
    %c0_i32 = arith.constant 0 : i32
    %c0_i32_0 = arith.constant 0 : i32
    return %arg0, %c0_i32 : i32, i32
  }
}

</mosaic_0001>

<bundles_post_ra>
// kernel: _lambda_.1
= control target key start
LH: loop header
LB: loop body
LE: loop exit
PB: predicated region body
PF: predicated region fallthrough
CT: control target
= control target key end

     0   :  { %vm16_vm0 = vcmask 261120   ;;  %s183_s0 = inlined_call_operand.vmem [shape: f32[16,32], index: 0, kind: input, shape index: {}]   ;;  %s184_s1 = inlined_call_operand.vmem [shape: f32[32,64], index: 1, kind: input, shape index: {}]   ;;  %s185_s2 = inlined_call_operand.hbm [shape: f32[16,64], index: 2, kind: output, shape index: {}]  }
   0x1   :  { %v12_v0 = vld [vmem:[%s183_s0] sm:$0xff] }
   0x2   :  { %7 = vsyncpa [#allocation3], 0  ;;  %v14_v1 = vmul.f32 %v12_v0, %v12_v0  ;;  %v13_v2 = vld [vmem:[%s183_s0 + $0x8] sm:$0xff]  ;;  %v50_v6 = vld [vmem:[%s184_s1 + $0x18] sm:$0xff]  ;;  %vm80_vm7 = vcmask 523264   ;;  %s89_s23 = sshll.u32 %s185_s2, 4  ;;  %s90_s23 = int_to_ptr.hbm [resolvable:$true] %s89_s23 }
   0x3   :  { %v15_v4 = vmul.f32 %v13_v2, %v13_v2  ;;  %69 = vmatpush.msra.mxu0 %v50_v6  ;;  %103 = vmatpush.msra.mxu1 %v50_v6  ;;  %v49_v7 = vld [vmem:[%s184_s1 + $0x10] sm:$0xff]  ;;  %v48_v8 = vld [vmem:[%s184_s1 + $0x8] sm:$0xff]  ;;  %v47_v9 = vld [vmem:[%s184_s1] sm:$0xff]  ;;  %s140_s1 = smov [#allocation2]   ;;  %s141_s24 = smov 128  }
   0x4   :  { %v17_v3 = vsel %vm16_vm0, %v14_v1, 0.0  ;;  %s87_s20 = sshll.u32 %s140_s1, 4  ;;  %s142_s25 = smov 8   ;;  %s88_s20 = int_to_ptr.vmem [resolvable:$true] %s87_s20 }
   0x5   :  { %18 = vadd.xlane.f32.xlu0 %v17_v3  ;;  %v20_v5 = vsel %vm16_vm0, %v15_v4, 0.0  ;;  %70 = vmatpush.msra.mxu0 %v49_v7 }
   0x6   :  { %104 = vmatpush.msra.mxu1 %v49_v7 }
   0x7   :  { %71 = vmatpush.msra.mxu0 %v48_v8 }
   0x8   :  { %105 = vmatpush.msra.mxu1 %v48_v8 }
   0x9   :  { %72 = vmatpush.msra.mxu0 %v47_v9 }
   0xa   :  { %106 = vmatpush.msra.mxu1 %v47_v9 }
   0xd   :  { %21 = vadd.xlane.f32.xlu0 %v20_v5 }
  0x78   :  { %v19_v10 = vpop.xlane.xlu0 %18 }
  0x79   :  { %v23_v11 = vmax.f32 %v19_v10, 1e-24 }
  0x7b   :  { %110 = vrsqrt.f32 %v23_v11  ;;  %vm31_vm2 = vweird.f32 %v23_v11 }
  0x80   :  { %v22_v12 = vpop.xlane.xlu0 %21 }
  0x81   :  { %v111_v13 = vpop.eup %110  ;;  %v24_v14 = vmax.f32 %v22_v12, 1e-24 }
  0x82   :  { %v26_v15 = vmul.f32 %v111_v13, %v23_v11  ;;  %vm32_vm1 = vweird.f32 %v111_v13 }
  0x83   :  { %112 = vrsqrt.f32 %v24_v14  ;;  %vm33_vm3 = vmor %vm31_vm2, %vm32_vm1  ;;  %vm41_vm5 = vweird.f32 %v24_v14 }
  0x84   :  { %v27_v16 = vmul.f32 %v111_v13, %v26_v15 }
  0x86   :  { %v28_v17 = vmul.f32 0.5, %v27_v16 }
  0x88   :  { %v29_v18 = vsub.f32 1.5, %v28_v17 }
  0x89   :  { %v113_v19 = vpop.eup %112 }
  0x8a   :  { %v36_v20 = vmul.f32 %v113_v19, %v24_v14  ;;  %v30_v21 = vmul.f32 %v111_v13, %v29_v18  ;;  %vm42_vm4 = vweird.f32 %v113_v19 }
  0x8b   :  { %vm43_vm6 = vmor %vm41_vm5, %vm42_vm4 }
  0x8c   :  { %v37_v22 = vmul.f32 %v113_v19, %v36_v20  ;;  %v34_v23 = vsel %vm33_vm3, %v111_v13, %v30_v21 }
  0x8d   :  { %v45_v24 = vmul.f32 %v34_v23, %v12_v0 }
  0x8e   :  { %v38_v25 = vmul.f32 0.5, %v37_v22 }
  0x8f   :  { %101 = vmatmul.msk.f32.vlgmr.msra.gmra.mxu0 %vm16_vm0, %v45_v24 }
  0x90   :  { %v39_v26 = vsub.f32 1.5, %v38_v25 }
  0x92   :  { %v40_v27 = vmul.f32 %v113_v19, %v39_v26 }
  0x94   :  { %v44_v28 = vsel %vm43_vm6, %v113_v19, %v40_v27 }
  0x95   :  { %v46_v29 = vmul.f32 %v44_v28, %v13_v2 }
  0x97   :  { %102 = vmatmul.msk.f32.vlgmr.msra.gmra.mxu1 %vm16_vm0, %v46_v29 }
 0x10c   :  { %v74_v30 = vpop.f32.mrf.mxu0 }
 0x10d   :  { %81 = vst.msk [vmem:[#allocation2] sm:$0xff] %vm80_vm7, %v74_v30 }
 0x114   :  { %v77_v31 = vpop.f32.mrf.mxu1 }
 0x115   :  { %82 = vst.msk [vmem:[#allocation2 + $0x8] sm:$0xff] %vm80_vm7, %v77_v31 }
 0x116   :  { %95 = dma.vmem_to_hbm [thread:$0]  %s88_s20, 256, %s90_s23, [#allocation3], %s141_s24, %s141_s24, %s142_s25  }
 0x117   :  { %138 = dma.done.wait [#allocation3], 256  }
 0x118   :  { %139 = vsyncadd [#allocation3], 4294967040 }
 0x119   :  { %100 = vsyncpa [#allocation3], 1 }

</bundles_post_ra>
